<compile_context>
chip_gen: v7x
topology: tpu7x:2x2x1
jax: 0.10.0
libtpu: 0.0.40
codegen_flags: <defaults>
</compile_context>

<pallas_src>
import functools

import jax
import jax.numpy as jnp
from jax import lax
from jax.experimental import pallas as pl
from jax.experimental.pallas import tpu as pltpu


def _round_up(x, m):
    return ((x + m - 1) // m) * m


def _mlp_kernel(feat_ref, w1_ref, b1_ref, w2_ref, b2_ref, w3_ref, b3_ref,
                o_ref, *, normalize_score):
    # feat arrives in its HBM dtype (f32); cast to the MXU operand dtype
    # in-kernel (a few VPU vregs) instead of a wrapper-level astype HBM pass.
    x = feat_ref[...].astype(w1_ref.dtype)              # (TILE_B, E)

    # fc_1, feature-major: (H0p, E) x (TILE_B, E) contracting both minor dims
    # (native q@k.T MXU pattern, no materialized transpose of the big operand).
    # Batch lands on the lane axis of the result.
    h1 = lax.dot_general(w1_ref[...], x, (((1,), (1,)), ((), ())),
                         preferred_element_type=jnp.float32)   # (H0p, TILE_B)
    h1 = jnp.maximum(h1 + b1_ref[...], 0.0)              # bias (H0p,1) lane-broadcast
    # Dropout is identity at inference time (PyTorch eval-mode semantics).
    # TODO(synk): training-mode dropout (pltpu.prng_seed / prng_random_bits).

    # fc_2: (H1, H0p) @ (H0p, TILE_B) -> (H1, TILE_B), f32 accumulation.
    h2 = jnp.dot(w2_ref[...], h1.astype(w2_ref.dtype),
                 preferred_element_type=jnp.float32)
    h2 = jnp.maximum(h2 + b2_ref[...], 0.0)

    # fc_3 (16 -> 1) off the MXU: VPU broadcast-mul + XLU sublane reduce.
    logits = jnp.sum(h2 * w3_ref[...], axis=0, keepdims=True) + b3_ref[...]

    if normalize_score:
        out = jax.nn.sigmoid(logits)
    else:
        out = jnp.maximum(logits, 0.0)
    o_ref[...] = out.astype(o_ref.dtype)                 # (1, TILE_B), lane-dense


def prepare_params(params, *, matmul_dtype=jnp.bfloat16):
    """Pad / reshape PyTorch-layout params (W: (out, in), b: (out,)) for the
    kernel.  Hidden width is zero-padded up to a multiple of 16 (bf16 sublane
    packing; inert through ReLU since padded b1 rows and padded w2 columns are
    exactly 0).  Only MXU operands (w1, w2) are cast to `matmul_dtype`;
    biases and the fc_3 row stay f32 (elementwise path, v5e-friendly)."""
    w1, b1, w2, b2, w3, b3 = params
    h0, e = w1.shape
    h1 = w2.shape[0]
    h0p = _round_up(h0, 16)                              # 300 -> 304
    w1p = jnp.zeros((h0p, e), jnp.float32).at[:h0, :].set(w1.astype(jnp.float32))
    b1p = jnp.zeros((h0p, 1), jnp.float32).at[:h0, 0].set(b1.astype(jnp.float32))
    w2p = jnp.zeros((h1, h0p), jnp.float32).at[:, :h0].set(w2.astype(jnp.float32))
    b2p = b2.astype(jnp.float32).reshape(h1, 1)
    w3p = w3.astype(jnp.float32).reshape(h1, 1)          # torch (1, H1) -> column (H1, 1)
    b3p = b3.astype(jnp.float32).reshape(1, 1)
    return (w1p.astype(matmul_dtype), b1p, w2p.astype(matmul_dtype), b2p, w3p, b3p)


def dense_feat_nn_forward(feat, prepared_params, *, normalize_score=True,
                          max_tile_b=4096):
    """feat: (B, extra_dim). Returns (B,) float32 (torch .squeeze() of (B, 1)).
    The torch forward ignores `x` and `lengths`; only `feat` feeds the MLP."""
    w1p, b1p, w2p, b2p, w3p, b3p = prepared_params
    B, E = feat.shape
    assert max_tile_b % 256 == 0 and max_tile_b > 0

    # Tile heuristic: 256-aligned tiles (MXU output lane-group width), at
    # least 2 (even-count) grid steps once B > 256 so the "parallel" batch
    # axis shards across both v7x TensorCores and input DMA double-buffers.
    if B <= 256:
        tile_b = B                                    # single full-extent block
    else:
        n_steps = max(2, pl.cdiv(B, max_tile_b))
        n_steps += n_steps % 2                        # even split (dual-TC balance)
        tile_b = min(max_tile_b, _round_up(pl.cdiv(B, n_steps), 256))
    grid = (pl.cdiv(B, tile_b),)
    # No wrapper-level pad/astype: the ragged last block's tail reads are
    # unspecified but per-column contained and its tail writes are masked.
    # Invariant to preserve: no cross-row reduction may ever be added here.

    h0p, h1d = w1p.shape[0], w2p.shape[0]
    w_itemsize = jnp.dtype(w1p.dtype).itemsize
    feat_itemsize = jnp.dtype(feat.dtype).itemsize
    param_bytes = int((w1p.size + w2p.size) * w_itemsize
                      + (b1p.size + b2p.size + w3p.size + b3p.size) * 4)
    cost = pl.CostEstimate(
        flops=2 * B * (E * h0p + h0p * h1d + h1d),
        transcendentals=B if normalize_score else 0,
        bytes_accessed=B * E * feat_itemsize + B * 4 + param_bytes,
    )

    out2d = pl.pallas_call(
        functools.partial(_mlp_kernel, normalize_score=normalize_score),
        out_shape=jax.ShapeDtypeStruct((1, B), jnp.float32),
        grid=grid,
        in_specs=[
            pl.BlockSpec((tile_b, E), lambda i: (i, 0)),   # feat: tiled over batch
            pl.BlockSpec(w1p.shape, lambda i: (0, 0)),     # weights/biases: VMEM-resident
            pl.BlockSpec(b1p.shape, lambda i: (0, 0)),
            pl.BlockSpec(w2p.shape, lambda i: (0, 0)),
            pl.BlockSpec(b2p.shape, lambda i: (0, 0)),
            pl.BlockSpec(w3p.shape, lambda i: (0, 0)),
            pl.BlockSpec(b3p.shape, lambda i: (0, 0)),
        ],
        out_specs=pl.BlockSpec((1, tile_b), lambda i: (0, i)),
        compiler_params=pltpu.CompilerParams(
            dimension_semantics=("parallel",),             # dual-TC sharding on v7x
            vmem_limit_bytes=48 * 1024 * 1024,             # fits v7x 64 MiB physical
        ),
        cost_estimate=cost,
    )(feat, w1p, b1p, w2p, b2p, w3p, b3p)

    return out2d.reshape(-1)[:B]


def init_params(key, extra_dim, hidden_size=(300, 16)):
    """nn.Linear-style init, PyTorch layout: W (out, in), b (out,)."""
    h0, h1 = hidden_size
    ks = jax.random.split(key, 6)

    def lin(kw, kb, fan_in, fan_out):
        bound = 1.0 / float(fan_in) ** 0.5
        w = jax.random.uniform(kw, (fan_out, fan_in), jnp.float32, -bound, bound)
        b = jax.random.uniform(kb, (fan_out,), jnp.float32, -bound, bound)
        return w, b

    w1, b1 = lin(ks[0], ks[1], extra_dim, h0)
    w2, b2 = lin(ks[2], ks[3], h0, h1)
    w3, b3 = lin(ks[4], ks[5], h1, 1)
    return (w1, b1, w2, b2, w3, b3)


def _ref_forward(feat, params, normalize_score):
    w1, b1, w2, b2, w3, b3 = params
    h = jnp.maximum(feat @ w1.T + b1, 0.0)
    h = jnp.maximum(h @ w2.T + b2, 0.0)
    z = h @ w3.T + b3
    z = jax.nn.sigmoid(z) if normalize_score else jnp.maximum(z, 0.0)
    return z.squeeze(-1)


if __name__ == "__main__":
    key = jax.random.PRNGKey(0)
    k_feat, k_param, k_feat2 = jax.random.split(key, 3)

    batch, extra_dim, hidden = 8, 32, (300, 16)
    # Dense_feat_NN.forward ignores x and lengths; only feat feeds the MLP.
    feat = jax.random.normal(k_feat, (batch, extra_dim), jnp.float32)
    params = init_params(k_param, extra_dim, hidden)

    # f32 MXU operands: exact reference check.
    prep_f32 = prepare_params(params, matmul_dtype=jnp.float32)
    ref = _ref_forward(feat, params, True)

    out = dense_feat_nn_forward(feat, prep_f32, normalize_score=True)
    jax.block_until_ready(out)
    assert out.shape == (batch,)
    assert jnp.allclose(out, ref, atol=1e-4, rtol=1e-4), "sigmoid path mismatch"

    out_r = dense_feat_nn_forward(feat, prep_f32, normalize_score=False)
    jax.block_until_ready(out_r)
    assert jnp.allclose(out_r, _ref_forward(feat, params, False),
                        atol=1e-4, rtol=1e-4), "relu path mismatch"

    # Multi-step grid + ragged last block (exercises cdiv grid, masked edge
    # writes, parallel axis) — no wrapper-side padding of feat.
    batch2 = 300
    feat2 = jax.random.normal(k_feat2, (batch2, extra_dim), jnp.float32)
    out2 = dense_feat_nn_forward(feat2, prep_f32, normalize_score=True,
                                 max_tile_b=256)
    jax.block_until_ready(out2)
    assert out2.shape == (batch2,)
    assert jnp.allclose(out2, _ref_forward(feat2, params, True),
                        atol=1e-4, rtol=1e-4), "multi-tile / ragged mismatch"

    # Default path: bf16 MXU operands, f32 accumulate + f32 elementwise.
    prep_bf16 = prepare_params(params)                   # matmul_dtype=bf16 default
    out_bf = dense_feat_nn_forward(feat, prep_bf16, normalize_score=True)
    jax.block_until_ready(out_bf)
    assert jnp.allclose(out_bf, ref, atol=5e-2), "bf16 path mismatch"

    out_bf2 = dense_feat_nn_forward(feat2, prep_bf16, normalize_score=True,
                                    max_tile_b=256)
    jax.block_until_ready(out_bf2)
    assert jnp.allclose(out_bf2, _ref_forward(feat2, params, True),
                        atol=5e-2), "bf16 ragged mismatch"

    print("KERNEL_OK")
</pallas_src>

<mosaic_0001>
module attributes {stable_mosaic.version = 11 : i64} {
  func.func @_mlp_kernel(%arg0: i32, %arg1: memref<8x32xf32, #tpu.memory_space<vmem>>, %arg2: memref<304x32xf32, #tpu.memory_space<vmem>>, %arg3: memref<304x1xf32, #tpu.memory_space<vmem>>, %arg4: memref<16x304xf32, #tpu.memory_space<vmem>>, %arg5: memref<16x1xf32, #tpu.memory_space<vmem>>, %arg6: memref<16x1xf32, #tpu.memory_space<vmem>>, %arg7: memref<1x1xf32, #tpu.memory_space<vmem>>, %arg8: memref<1x8xf32, #tpu.memory_space<vmem>>) attributes {dimension_semantics = [#tpu.dimension_semantics<parallel>], iteration_bounds = array<i64: 1>, scalar_prefetch = 0 : i64, scratch_operands = 0 : i64, tpu.core_type = #tpu.core_type<tc>, window_params = [{transform_indices = @transform_0, window_bounds = array<i64: 8, 32>}, {pipeline_mode = #tpu.pipeline_mode<synchronous>, transform_indices = @transform_1, window_bounds = array<i64: 304, 32>}, {pipeline_mode = #tpu.pipeline_mode<synchronous>, transform_indices = @transform_2, window_bounds = array<i64: 304, 1>}, {pipeline_mode = #tpu.pipeline_mode<synchronous>, transform_indices = @transform_3, window_bounds = array<i64: 16, 304>}, {pipeline_mode = #tpu.pipeline_mode<synchronous>, transform_indices = @transform_4, window_bounds = array<i64: 16, 1>}, {pipeline_mode = #tpu.pipeline_mode<synchronous>, transform_indices = @transform_5, window_bounds = array<i64: 16, 1>}, {pipeline_mode = #tpu.pipeline_mode<synchronous>, transform_indices = @transform_6, window_bounds = array<i64: 1, 1>}, {transform_indices = @transform_7, window_bounds = array<i64: 1, 8>}]} {
    %c0 = arith.constant 0 : index
    %c0_0 = arith.constant 0 : index
    %0 = vector.load %arg1[%c0, %c0_0] : memref<8x32xf32, #tpu.memory_space<vmem>>, vector<8x32xf32>
    %c0_1 = arith.constant 0 : index
    %c0_2 = arith.constant 0 : index
    %1 = vector.load %arg2[%c0_1, %c0_2] : memref<304x32xf32, #tpu.memory_space<vmem>>, vector<304x32xf32>
    %cst = arith.constant dense<0.000000e+00> : vector<304x8xf32>
    %2 = tpu.matmul %1, %0, %cst {dimension_numbers = #tpu.dot_dimension_numbers<[1], [1], [0], [0], [0, 0, 1, 0], [], []>} : vector<304x32xf32>, vector<8x32xf32>, vector<304x8xf32> -> vector<304x8xf32>
    %c0_3 = arith.constant 0 : index
    %c0_4 = arith.constant 0 : index
    %3 = vector.load %arg3[%c0_3, %c0_4] : memref<304x1xf32, #tpu.memory_space<vmem>>, vector<304x1xf32>
    %4 = vector.broadcast %3 : vector<304x1xf32> to vector<304x8xf32>
    %5 = arith.addf %2, %4 : vector<304x8xf32>
    %cst_5 = arith.constant 0.000000e+00 : f32
    %6 = vector.broadcast %cst_5 : f32 to vector<304x8xf32>
    %7 = arith.maximumf %5, %6 : vector<304x8xf32>
    %c0_6 = arith.constant 0 : index
    %c0_7 = arith.constant 0 : index
    %8 = vector.load %arg4[%c0_6, %c0_7] : memref<16x304xf32, #tpu.memory_space<vmem>>, vector<16x304xf32>
    %cst_8 = arith.constant dense<0.000000e+00> : vector<16x8xf32>
    %9 = tpu.matmul %8, %7, %cst_8 {dimension_numbers = #tpu.dot_dimension_numbers<[1], [0], [0], [1], [0, 0, 1, 1], [], []>} : vector<16x304xf32>, vector<304x8xf32>, vector<16x8xf32> -> vector<16x8xf32>
    %c0_9 = arith.constant 0 : index
    %c0_10 = arith.constant 0 : index
    %10 = vector.load %arg5[%c0_9, %c0_10] : memref<16x1xf32, #tpu.memory_space<vmem>>, vector<16x1xf32>
    %11 = vector.broadcast %10 : vector<16x1xf32> to vector<16x8xf32>
    %12 = arith.addf %9, %11 : vector<16x8xf32>
    %cst_11 = arith.constant 0.000000e+00 : f32
    %13 = vector.broadcast %cst_11 : f32 to vector<16x8xf32>
    %14 = arith.maximumf %12, %13 : vector<16x8xf32>
    %c0_12 = arith.constant 0 : index
    %c0_13 = arith.constant 0 : index
    %15 = vector.load %arg6[%c0_12, %c0_13] : memref<16x1xf32, #tpu.memory_space<vmem>>, vector<16x1xf32>
    %16 = vector.broadcast %15 : vector<16x1xf32> to vector<16x8xf32>
    %17 = arith.mulf %14, %16 : vector<16x8xf32>
    %cst_14 = arith.constant dense<0.000000e+00> : vector<8xf32>
    %18 = vector.multi_reduction <add>, %17, %cst_14 [0] : vector<16x8xf32> to vector<8xf32>
    %19 = vector.shape_cast %18 : vector<8xf32> to vector<1x8xf32>
    %c0_15 = arith.constant 0 : index
    %c0_16 = arith.constant 0 : index
    %20 = vector.load %arg7[%c0_15, %c0_16] : memref<1x1xf32, #tpu.memory_space<vmem>>, vector<1x1xf32>
    %21 = vector.broadcast %20 : vector<1x1xf32> to vector<1x8xf32>
    %22 = arith.addf %19, %21 : vector<1x8xf32>
    %23 = arith.negf %22 : vector<1x8xf32>
    %24 = math.exp %23 : vector<1x8xf32>
    %cst_17 = arith.constant 1.000000e+00 : f32
    %25 = vector.broadcast %cst_17 : f32 to vector<1x8xf32>
    %26 = arith.addf %25, %24 : vector<1x8xf32>
    %27 = arith.divf %25, %26 : vector<1x8xf32>
    %c0_18 = arith.constant 0 : index
    %c0_19 = arith.constant 0 : index
    %28 = vector.load %arg8[%c0_18, %c0_19] : memref<1x8xf32, #tpu.memory_space<vmem>>, vector<1x8xf32>
    tpu.vector_store %arg8[%c0_18, %c0_19], %27 {strides = array<i32>} : memref<1x8xf32, #tpu.memory_space<vmem>>, vector<1x8xf32>,
    return
  }
  func.func @transform_0(%arg0: i32) -> (i32, i32) {
    %c0_i32 = arith.constant 0 : i32
    %c0_i32_0 = arith.constant 0 : i32
    return %arg0, %c0_i32 : i32, i32
  }
  func.func @transform_1(%arg0: i32) -> (i32, i32) {
    %c0_i32 = arith.constant 0 : i32
    %c0_i32_0 = arith.constant 0 : i32
    %c0_i32_1 = arith.constant 0 : i32
    return %c0_i32, %c0_i32_0 : i32, i32
  }
  func.func @transform_2(%arg0: i32) -> (i32, i32) {
    %c0_i32 = arith.constant 0 : i32
    %c0_i32_0 = arith.constant 0 : i32
    %c0_i32_1 = arith.constant 0 : i32
    return %c0_i32, %c0_i32_0 : i32, i32
  }
  func.func @transform_3(%arg0: i32) -> (i32, i32) {
    %c0_i32 = arith.constant 0 : i32
    %c0_i32_0 = arith.constant 0 : i32
    %c0_i32_1 = arith.constant 0 : i32
    return %c0_i32, %c0_i32_0 : i32, i32
  }
  func.func @transform_4(%arg0: i32) -> (i32, i32) {
    %c0_i32 = arith.constant 0 : i32
    %c0_i32_0 = arith.constant 0 : i32
    %c0_i32_1 = arith.constant 0 : i32
    return %c0_i32, %c0_i32_0 : i32, i32
  }
  func.func @transform_5(%arg0: i32) -> (i32, i32) {
    %c0_i32 = arith.constant 0 : i32
    %c0_i32_0 = arith.constant 0 : i32
    %c0_i32_1 = arith.constant 0 : i32
    return %c0_i32, %c0_i32_0 : i32, i32
  }
  func.func @transform_6(%arg0: i32) -> (i32, i32) {
    %c0_i32 = arith.constant 0 : i32
    %c0_i32_0 = arith.constant 0 : i32
    %c0_i32_1 = arith.constant 0 : i32
    return %c0_i32, %c0_i32_0 : i32, i32
  }
  func.func @transform_7(%arg0: i32) -> (i32, i32) {
    %c0_i32 = arith.constant 0 : i32
    %c0_i32_0 = arith.constant 0 : i32
    return %c0_i32, %arg0 : i32, i32
  }
}

</mosaic_0001>

<bundles_post_ra>
// kernel: tpu_custom_call.1
= control target key start
LH: loop header
LB: loop body
LE: loop exit
PB: predicated region body
PF: predicated region fallthrough
CT: control target
= control target key end

     0   :  { %s1648_s0 = inlined_call_operand.vmem [shape: f32[8,32], index: 0, kind: input, shape index: {}]   ;;  %s1649_s1 = inlined_call_operand.vmem [shape: f32[304,32], index: 1, kind: input, shape index: {}]   ;;  %s1650_s2 = inlined_call_operand.vmem [shape: f32[304,1], index: 2, kind: input, shape index: {}]   ;;  %s1651_s3 = inlined_call_operand.vmem [shape: f32[16,304], index: 3, kind: input, shape index: {}]   ;;  %s1652_s4 = inlined_call_operand.vmem [shape: f32[16,1], index: 4, kind: input, shape index: {}]   ;;  %s1653_s5 = inlined_call_operand.vmem [shape: f32[16,1], index: 5, kind: input, shape index: {}]   ;;  %s1654_s6 = inlined_call_operand.<no memory space> [shape: f32[1,1], index: 6, kind: input, shape index: {}]   ;;  %s1655_s7 = inlined_call_operand.hbm [shape: f32[1,8], index: 7, kind: output, shape index: {}]  }
   0x1   :  { %v12_v0 = vstv %s1654_s6 }
   0x2   :  { %13 = vst [vmem:[#allocation2] sm:$0x1] %v12_v0 }
   0x3   :  { %v29_v1 = vld [vmem:[%s1648_s0] sm:$0xff]  ;;  %vm296_vm0 = vcmask 261120   ;;  %v1218_v4 = vmov 0   ;;  %v31_v5 = vld [vmem:[%s1649_s1 + $0x8] sm:$0xff]  ;;  %v32_v7 = vld [vmem:[%s1649_s1 + $0x10] sm:$0xff] }
   0x4   :  { %v30_v2 = vld [vmem:[%s1649_s1] sm:$0xff]  ;;  %1068 = vmatprep.subr.msk.mxu0 %vm296_vm0, %v29_v1  ;;  %1188 = vset.pattern.permute.xlu0 %v1218_v4  ;;  %v85_v8 = vld [vmem:[%s1650_s2 + $0x88] sm:$0xff]  ;;  %v33_v10 = vld [vmem:[%s1649_s1 + $0x18] sm:$0xff] }
   0x5   :  { %1070 = vmatprep.mubr.msk.f32.mxu0 %vm296_vm0, %v30_v2  ;;  %v84_v3 = vld [vmem:[%s1650_s2 + $0x80] sm:$0xff]  ;;  %1069 = vmatpush3.xpose.msk.msra.mxu0 %vm296_vm0, %v29_v1  ;;  %v69_v9 = vld [vmem:[%s1650_s2 + $0x8] sm:$0xff]  ;;  %v86_v12 = vld [vmem:[%s1650_s2 + $0x90] sm:$0xff] }
   0x6   :  { %v68_v6 = vld [vmem:[%s1650_s2] sm:$0xff]  ;;  %188 = vperm.xlu0 %1188, %v84_v3   ;;  %1189 = vset.pattern.permute.xlu1 %v1218_v4  ;;  %v87_v13 = vld [vmem:[%s1650_s2 + $0x98] sm:$0xff]  ;;  %v35_v14 = vld [vmem:[%s1649_s1 + $0x28] sm:$0xff] }
   0x7   :  { %108 = vperm.xlu1 %1189, %v68_v6   ;;  %v34_v11 = vld [vmem:[%s1649_s1 + $0x20] sm:$0xff]  ;;  %v36_v15 = vld [vmem:[%s1649_s1 + $0x30] sm:$0xff]  ;;  %v71_v17 = vld [vmem:[%s1650_s2 + $0x18] sm:$0xff] }
   0x8   :  { %1071 = vmatmul.mubr.msk.f32.vlgmr.msra.gmra.mrb[0].mxu0 %vm296_vm0, %v31_v5  ;;  %v70_v16 = vld [vmem:[%s1650_s2 + $0x10] sm:$0xff]  ;;  %v37_v18 = vld [vmem:[%s1649_s1 + $0x38] sm:$0xff]  ;;  %v38_v19 = vld [vmem:[%s1649_s1 + $0x40] sm:$0xff] }
   0x9   :  { %1073 = vmatprep.mubr.msk.f32.mxu0 %vm296_vm0, %v32_v7  ;;  %v88_v20 = vld [vmem:[%s1650_s2 + $0xa0] sm:$0xff]  ;;  %v89_v21 = vld [vmem:[%s1650_s2 + $0xa8] sm:$0xff]  ;;  %v40_v23 = vld [vmem:[%s1649_s1 + $0x50] sm:$0xff] }
   0xa   :  { %193 = vperm.xlu0 %1188, %v85_v8   ;;  %v39_v22 = vld [vmem:[%s1649_s1 + $0x48] sm:$0xff]  ;;  %v72_v24 = vld [vmem:[%s1650_s2 + $0x20] sm:$0xff]  ;;  %v41_v26 = vld [vmem:[%s1649_s1 + $0x58] sm:$0xff] }
   0xb   :  { %113 = vperm.xlu1 %1189, %v69_v9   ;;  %v73_v25 = vld [vmem:[%s1650_s2 + $0x28] sm:$0xff]  ;;  %v42_v27 = vld [vmem:[%s1649_s1 + $0x60] sm:$0xff]  ;;  %v90_v28 = vld [vmem:[%s1650_s2 + $0xb0] sm:$0xff] }
   0xc   :  { %1074 = vmatmul.mubr.msk.f32.gmra.mrb[2].mxu0 %vm296_vm0, %v33_v10  ;;  %v91_v29 = vld [vmem:[%s1650_s2 + $0xb8] sm:$0xff]  ;;  %v43_v30 = vld [vmem:[%s1649_s1 + $0x68] sm:$0xff]  ;;  %v44_v31 = vld [vmem:[%s1649_s1 + $0x70] sm:$0xff] }
   0xd   :  { %1076 = vmatprep.mubr.msk.f32.mxu0 %vm296_vm0, %v34_v11 }
   0xe   :  { %198 = vperm.xlu0 %1188, %v86_v12  }
   0xf   :  { %203 = vperm.xlu1 %1189, %v87_v13  }
  0x10   :  { %1077 = vmatmul.mubr.msk.f32.gmra.mrb[4].mxu0 %vm296_vm0, %v35_v14 }
  0x11   :  { %1079 = vmatprep.mubr.msk.f32.mxu0 %vm296_vm0, %v36_v15 }
  0x12   :  { %118 = vperm.xlu0 %1188, %v70_v16  }
  0x13   :  { %123 = vperm.xlu1 %1189, %v71_v17  }
  0x14   :  { %1080 = vmatmul.mubr.msk.f32.gmra.mrb[6].mxu0 %vm296_vm0, %v37_v18 }
  0x15   :  { %1082 = vmatprep.mubr.msk.f32.mxu0 %vm296_vm0, %v38_v19 }
  0x16   :  { %208 = vperm.xlu0 %1188, %v88_v20  }
  0x17   :  { %213 = vperm.xlu1 %1189, %v89_v21  }
  0x18   :  { %1083 = vmatmul.mubr.msk.f32.gmra.mrb[8].mxu0 %vm296_vm0, %v39_v22 }
  0x19   :  { %1085 = vmatprep.mubr.msk.f32.mxu0 %vm296_vm0, %v40_v23 }
  0x1a   :  { %128 = vperm.xlu0 %1188, %v72_v24  }
  0x1b   :  { %133 = vperm.xlu1 %1189, %v73_v25  }
  0x1c   :  { %1086 = vmatmul.mubr.msk.f32.gmra.mrb[10].mxu0 %vm296_vm0, %v41_v26 }
  0x1d   :  { %1088 = vmatprep.mubr.msk.f32.mxu0 %vm296_vm0, %v42_v27 }
  0x1e   :  { %218 = vperm.xlu0 %1188, %v90_v28  }
  0x1f   :  { %14 = vsyncpa [#allocation4], 0  ;;  %v74_v32 = vld [vmem:[%s1650_s2 + $0x30] sm:$0xff]  ;;  %223 = vperm.xlu1 %1189, %v91_v29   ;;  %v75_v33 = vld [vmem:[%s1650_s2 + $0x38] sm:$0xff]  ;;  %vm725_vm1 = vcmask 392192   ;;  %vm898_vm2 = vcmask 64512  }
  0x20   :  { %1089 = vmatmul.mubr.msk.f32.gmra.mrb[12].mxu0 %vm296_vm0, %v43_v30  ;;  %v45_v34 = vld [vmem:[%s1649_s1 + $0x78] sm:$0xff]  ;;  %v46_v35 = vld [vmem:[%s1649_s1 + $0x80] sm:$0xff]  ;;  %v93_v37 = vld [vmem:[%s1650_s2 + $0xc8] sm:$0xff]  ;;  %vm925_vm3 = vcmask 57344  }
  0x21   :  { %1091 = vmatprep.mubr.msk.f32.mxu0 %vm296_vm0, %v44_v31  ;;  %v92_v36 = vld [vmem:[%s1650_s2 + $0xc0] sm:$0xff]  ;;  %v47_v38 = vld [vmem:[%s1649_s1 + $0x88] sm:$0xff]  ;;  %v48_v39 = vld [vmem:[%s1649_s1 + $0x90] sm:$0xff] }
  0x22   :  { %138 = vperm.xlu0 %1188, %v74_v32   ;;  %v76_v40 = vld [vmem:[%s1650_s2 + $0x40] sm:$0xff]  ;;  %v77_v41 = vld [vmem:[%s1650_s2 + $0x48] sm:$0xff]  ;;  %v49_v42 = vld [vmem:[%s1649_s1 + $0x98] sm:$0xff] }
  0x23   :  { %143 = vperm.xlu1 %1189, %v75_v33   ;;  %v50_v43 = vld [vmem:[%s1649_s1 + $0xa0] sm:$0xff]  ;;  %v94_v44 = vld [vmem:[%s1650_s2 + $0xd0] sm:$0xff]  ;;  %v95_v45 = vld [vmem:[%s1650_s2 + $0xd8] sm:$0xff] }
  0x24   :  { %1092 = vmatmul.mubr.msk.f32.gmra.mrb[14].mxu0 %vm296_vm0, %v45_v34  ;;  %v51_v46 = vld [vmem:[%s1649_s1 + $0xa8] sm:$0xff]  ;;  %v52_v47 = vld [vmem:[%s1649_s1 + $0xb0] sm:$0xff]  ;;  %v79_v49 = vld [vmem:[%s1650_s2 + $0x58] sm:$0xff] }
  0x25   :  { %1094 = vmatprep.mubr.msk.f32.mxu0 %vm296_vm0, %v46_v35  ;;  %v78_v48 = vld [vmem:[%s1650_s2 + $0x50] sm:$0xff]  ;;  %v53_v50 = vld [vmem:[%s1649_s1 + $0xb8] sm:$0xff]  ;;  %v54_v51 = vld [vmem:[%s1649_s1 + $0xc0] sm:$0xff] }
  0x26   :  { %228 = vperm.xlu0 %1188, %v92_v36   ;;  %v96_v52 = vld [vmem:[%s1650_s2 + $0xe0] sm:$0xff]  ;;  %v97_v53 = vld [vmem:[%s1650_s2 + $0xe8] sm:$0xff]  ;;  %v56_v55 = vld [vmem:[%s1649_s1 + $0xd0] sm:$0xff] }
  0x27   :  { %233 = vperm.xlu1 %1189, %v93_v37   ;;  %v55_v54 = vld [vmem:[%s1649_s1 + $0xc8] sm:$0xff]  ;;  %v80_v56 = vld [vmem:[%s1650_s2 + $0x60] sm:$0xff]  ;;  %v57_v58 = vld [vmem:[%s1649_s1 + $0xd8] sm:$0xff] }
  0x28   :  { %1095 = vmatmul.mubr.msk.f32.gmra.mrb[16].mxu0 %vm296_vm0, %v47_v38  ;;  %v81_v57 = vld [vmem:[%s1650_s2 + $0x68] sm:$0xff]  ;;  %v58_v59 = vld [vmem:[%s1649_s1 + $0xe0] sm:$0xff]  ;;  %v98_v60 = vld [vmem:[%s1650_s2 + $0xf0] sm:$0xff] }
  0x29   :  { %1097 = vmatprep.mubr.msk.f32.mxu0 %vm296_vm0, %v48_v39  ;;  %v99_v61 = vld [vmem:[%s1650_s2 + $0xf8] sm:$0xff]  ;;  %v59_v62 = vld [vmem:[%s1649_s1 + $0xe8] sm:$0xff]  ;;  %v60_v63 = vld [vmem:[%s1649_s1 + $0xf0] sm:$0xff] }
  0x2a   :  { %148 = vperm.xlu0 %1188, %v76_v40   ;;  %v82_v0 = vld [vmem:[%s1650_s2 + $0x70] sm:$0xff]  ;;  %v83_v1 = vld [vmem:[%s1650_s2 + $0x78] sm:$0xff]  ;;  %v62_v3 = vld [vmem:[%s1649_s1 + $0x100] sm:$0xff] }
  0x2b   :  { %153 = vperm.xlu1 %1189, %v77_v41   ;;  %v61_v2 = vld [vmem:[%s1649_s1 + $0xf8] sm:$0xff]  ;;  %v100_v4 = vld [vmem:[%s1650_s2 + $0x100] sm:$0xff]  ;;  %v101_v5 = vld [vmem:[%s1650_s2 + $0x108] sm:$0xff] }
  0x2c   :  { %1098 = vmatmul.mubr.msk.f32.gmra.mrb[18].mxu0 %vm296_vm0, %v49_v42  ;;  %v63_v6 = vld [vmem:[%s1649_s1 + $0x108] sm:$0xff]  ;;  %v64_v7 = vld [vmem:[%s1649_s1 + $0x110] sm:$0xff]  ;;  %v103_v9 = vld [vmem:[%s1650_s2 + $0x118] sm:$0xff] }
  0x2d   :  { %1100 = vmatprep.mubr.msk.f32.mxu0 %vm296_vm0, %v50_v43  ;;  %v102_v8 = vld [vmem:[%s1650_s2 + $0x110] sm:$0xff]  ;;  %v65_v10 = vld [vmem:[%s1649_s1 + $0x118] sm:$0xff]  ;;  %v66_v11 = vld [vmem:[%s1649_s1 + $0x120] sm:$0xff] }
  0x2e   :  { %238 = vperm.xlu0 %1188, %v94_v44   ;;  %v104_v12 = vld [vmem:[%s1650_s2 + $0x120] sm:$0xff]  ;;  %v105_v13 = vld [vmem:[%s1650_s2 + $0x128] sm:$0xff] }
  0x2f   :  { %243 = vperm.xlu1 %1189, %v95_v45   ;;  %v67_v14 = vld [vmem:[%s1649_s1 + $0x128] sm:$0xff]  ;;  %v713_v15 = vld [vmem:[%s1652_s4] sm:$0xff] }
  0x30   :  { %1101 = vmatmul.mubr.msk.f32.gmra.mrb[20].mxu0 %vm296_vm0, %v51_v46  ;;  %v714_v16 = vld [vmem:[%s1652_s4 + $0x8] sm:$0xff]  ;;  %v884_v17 = vld [vmem:[%s1653_s5] sm:$0xff] }
  0x31   :  { %1103 = vmatprep.mubr.msk.f32.mxu0 %vm296_vm0, %v52_v47  ;;  %v885_v18 = vld [vmem:[%s1653_s5 + $0x8] sm:$0xff]  ;;  %v908_v19 = vld [vmem:[#allocation2] sm:$0x1] }
  0x32   :  { %158 = vperm.xlu0 %1188, %v78_v48   ;;  %v708_v22 = vld [vmem:[%s1651_s3 + $0x8] sm:$0xff] }
  0x33   :  { %163 = vperm.xlu1 %1189, %v79_v49   ;;  %796 = vmatprep.mubr.f32.mxu1 %v708_v22 }
  0x34   :  { %1104 = vmatmul.mubr.msk.f32.gmra.mrb[22].mxu0 %vm296_vm0, %v53_v50 }
  0x35   :  { %1106 = vmatprep.mubr.msk.f32.mxu0 %vm296_vm0, %v54_v51 }
  0x36   :  { %248 = vperm.xlu0 %1188, %v96_v52  }
  0x37   :  { %253 = vperm.xlu1 %1189, %v97_v53  }
  0x38   :  { %1107 = vmatmul.mubr.msk.f32.gmra.mrb[24].mxu0 %vm296_vm0, %v55_v54 }
  0x39   :  { %1109 = vmatprep.mubr.msk.f32.mxu0 %vm296_vm0, %v56_v55 }
  0x3a   :  { %168 = vperm.xlu0 %1188, %v80_v56  }
  0x3b   :  { %173 = vperm.xlu1 %1189, %v81_v57  }
  0x3c   :  { %1110 = vmatmul.mubr.msk.f32.gmra.mrb[26].mxu0 %vm296_vm0, %v57_v58 }
  0x3d   :  { %1112 = vmatprep.mubr.msk.f32.mxu0 %vm296_vm0, %v58_v59 }
  0x3e   :  { %258 = vperm.xlu0 %1188, %v98_v60  }
  0x3f   :  { %263 = vperm.xlu1 %1189, %v99_v61  }
  0x40   :  { %1113 = vmatmul.mubr.msk.f32.gmra.mrb[28].mxu0 %vm296_vm0, %v59_v62 }
  0x41   :  { %1115 = vmatprep.mubr.msk.f32.mxu0 %vm296_vm0, %v60_v63 }
  0x42   :  { %178 = vperm.xlu0 %1188, %v82_v0  }
  0x43   :  { %183 = vperm.xlu1 %1189, %v83_v1  }
  0x44   :  { %1116 = vmatmul.mubr.msk.f32.gmra.mrb[30].mxu0 %vm296_vm0, %v61_v2 }
  0x45   :  { %1118 = vmatprep.mubr.msk.f32.mxu0 %vm296_vm0, %v62_v3 }
  0x46   :  { %268 = vperm.xlu0 %1188, %v100_v4  }
  0x47   :  { %273 = vperm.xlu1 %1189, %v101_v5  }
  0x48   :  { %1119 = vmatmul.mubr.msk.f32.gmra.mrb[32].mxu0 %vm296_vm0, %v63_v6 }
  0x49   :  { %1121 = vmatprep.mubr.msk.f32.mxu0 %vm296_vm0, %v64_v7 }
  0x4a   :  { %278 = vperm.xlu0 %1188, %v102_v8  }
  0x4b   :  { %283 = vperm.xlu1 %1189, %v103_v9  }
  0x4c   :  { %1122 = vmatmul.mubr.msk.f32.gmra.mrb[34].mxu0 %vm296_vm0, %v65_v10 }
  0x4d   :  { %1124 = vmatprep.mubr.msk.f32.mxu0 %vm296_vm0, %v66_v11 }
  0x4e   :  { %288 = vperm.xlu0 %1188, %v104_v12  }
  0x4f   :  { %293 = vperm.xlu1 %1189, %v105_v13  }
  0x50   :  { %1125 = vmatmul.mubr.msk.f32.gmra.mrb[36].mxu0 %vm296_vm0, %v67_v14 }
  0x52   :  { %717 = vperm.xlu0 %1188, %v713_v15  }
  0x53   :  { %722 = vperm.xlu1 %1189, %v714_v16  }
  0x56   :  { %888 = vperm.xlu0 %1188, %v884_v17  }
  0x57   :  { %893 = vperm.xlu1 %1189, %v885_v18  }
  0x5a   :  { %911 = vperm.xlu0 %1188, %v908_v19  }
  0x85   :  { %v1546_v21 = vpop.permute.xlu0 %188 }
  0x86   :  { %v109_v20 = vpop.permute.xlu1 %108 }
  0x89   :  { %v1551_v24 = vpop.permute.xlu0 %193 }
  0x8a   :  { %v114_v23 = vpop.permute.xlu1 %113 }
  0x8d   :  { %v1555_v26 = vpop.permute.xlu0 %198 }
  0x8e   :  { %v1553_v25 = vpop.permute.xlu1 %203 }
  0x91   :  { %v119_v28 = vpop.permute.xlu0 %118 }
  0x92   :  { %v124_v27 = vpop.permute.xlu1 %123 }
  0x95   :  { %v1559_v30 = vpop.permute.xlu0 %208 }
  0x96   :  { %v1557_v29 = vpop.permute.xlu1 %213 }
  0x99   :  { %v129_v32 = vpop.permute.xlu0 %128 }
  0x9a   :  { %v134_v31 = vpop.permute.xlu1 %133 }
  0x9d   :  { %v1563_v34 = vpop.permute.xlu0 %218 }
  0x9e   :  { %v1561_v33 = vpop.permute.xlu1 %223 }
  0xa1   :  { %v139_v36 = vpop.permute.xlu0 %138 }
  0xa2   :  { %v144_v35 = vpop.permute.xlu1 %143 }
  0xa5   :  { %v1567_v38 = vpop.permute.xlu0 %228 }
  0xa6   :  { %v1565_v37 = vpop.permute.xlu1 %233 }
  0xa9   :  { %v149_v40 = vpop.permute.xlu0 %148 }
  0xaa   :  { %v154_v39 = vpop.permute.xlu1 %153 }
  0xad   :  { %v1571_v42 = vpop.permute.xlu0 %238 }
  0xae   :  { %v1569_v41 = vpop.permute.xlu1 %243 }
  0xb1   :  { %v159_v51 = vpop.permute.xlu0 %158 }
  0xb2   :  { %v164_v48 = vpop.permute.xlu1 %163 }
  0xb5   :  { %v1579_v0 = vpop.permute.xlu0 %248 }
  0xb6   :  { %v1575_v61 = vpop.permute.xlu1 %253 }
  0xb9   :  { %v169_v12 = vpop.permute.xlu0 %168 }
  0xba   :  { %v174_v9 = vpop.permute.xlu1 %173 }
  0xdb   :  { %v1072_v43 = vpop.f32.mrb[0].mxu0 }
  0xdc   :  { %v486_v44 = vadd.f32 %v1072_v43, %v114_v23  ;;  %v480_v45 = vpop.f32.mrb[1].mxu0  ;;  %v1585_v23 = vpop.permute.xlu1 %263 }
  0xdd   :  { %v481_v46 = vadd.f32 %v480_v45, %v109_v20 }
  0xde   :  { %v670_v47 = vmax.f32 %v486_v44, 0.0 }
  0xdf   :  { %v669_v49 = vmax.f32 %v481_v46, 0.0  ;;  %v1075_v50 = vpop.f32.mrb[2].mxu0 }
  0xe0   :  { %v496_v52 = vadd.f32 %v1075_v50, %v124_v27  ;;  %v490_v53 = vpop.f32.mrb[3].mxu0  ;;  %v184_v46 = vpop.permute.xlu1 %183 }
  0xe1   :  { %v491_v54 = vadd.f32 %v490_v53, %v119_v28  ;;  %v1573_v55 = vpack.c.bf16 %v670_v47, %v669_v49 }
  0xe2   :  { %v672_v56 = vmax.f32 %v496_v52, 0.0 }
  0xe3   :  { %v671_v57 = vmax.f32 %v491_v54, 0.0  ;;  %v1078_v58 = vpop.f32.mrb[4].mxu0 }
  0xe4   :  { %v506_v59 = vadd.f32 %v1078_v58, %v134_v31  ;;  %v500_v60 = vpop.f32.mrb[5].mxu0  ;;  %v1589_v31 = vpop.permute.xlu0 %258 }
  0xe5   :  { %v1577_v62 = vpack.c.bf16 %v672_v56, %v671_v57  ;;  %v501_v63 = vadd.f32 %v500_v60, %v129_v32 }
  0xe6   :  { %v674_v1 = vmax.f32 %v506_v59, 0.0 }
  0xe7   :  { %v673_v2 = vmax.f32 %v501_v63, 0.0  ;;  %v1081_v3 = vpop.f32.mrb[6].mxu0 }
  0xe8   :  { %v516_v4 = vadd.f32 %v1081_v3, %v144_v35  ;;  %v510_v5 = vpop.f32.mrb[7].mxu0  ;;  %v179_v49 = vpop.permute.xlu0 %178 }
  0xe9   :  { %v1581_v6 = vpack.c.bf16 %v674_v1, %v673_v2  ;;  %v511_v7 = vadd.f32 %v510_v5, %v139_v36 }
  0xea   :  { %v676_v8 = vmax.f32 %v516_v4, 0.0 }
  0xeb   :  { %v675_v10 = vmax.f32 %v511_v7, 0.0  ;;  %v1084_v11 = vpop.f32.mrb[8].mxu0 }
  0xec   :  { %v526_v13 = vadd.f32 %v1084_v11, %v154_v39  ;;  %v520_v14 = vpop.f32.mrb[9].mxu0 }
  0xed   :  { %v1583_v15 = vpack.c.bf16 %v676_v8, %v675_v10  ;;  %v521_v16 = vadd.f32 %v520_v14, %v149_v40 }
  0xee   :  { %v678_v17 = vmax.f32 %v526_v13, 0.0 }
  0xef   :  { %v677_v18 = vmax.f32 %v521_v16, 0.0  ;;  %v1087_v19 = vpop.f32.mrb[10].mxu0 }
  0xf0   :  { %v536_v20 = vadd.f32 %v1087_v19, %v164_v48  ;;  %v530_v22 = vpop.f32.mrb[11].mxu0 }
  0xf1   :  { %v1587_v27 = vpack.c.bf16 %v678_v17, %v677_v18  ;;  %v531_v28 = vadd.f32 %v530_v22, %v159_v51 }
  0xf2   :  { %v680_v32 = vmax.f32 %v536_v20, 0.0 }
  0xf3   :  { %v679_v35 = vmax.f32 %v531_v28, 0.0  ;;  %v1090_v36 = vpop.f32.mrb[12].mxu0 }
  0xf4   :  { %v546_v39 = vadd.f32 %v1090_v36, %v174_v9  ;;  %v540_v43 = vpop.f32.mrb[13].mxu0 }
  0xf5   :  { %v1591_v44 = vpack.c.bf16 %v680_v32, %v679_v35  ;;  %v541_v40 = vadd.f32 %v540_v43, %v169_v12 }
  0xf6   :  { %v682_v45 = vmax.f32 %v546_v39, 0.0 }
  0xf7   :  { %v681_v47 = vmax.f32 %v541_v40, 0.0  ;;  %v1093_v48 = vpop.f32.mrb[14].mxu0 }
  0xf8   :  { %v556_v50 = vadd.f32 %v1093_v48, %v184_v46  ;;  %v550_v52 = vpop.f32.mrb[15].mxu0 }
  0xf9   :  { %v1593_v53 = vpack.c.bf16 %v682_v45, %v681_v47  ;;  %v551_v51 = vadd.f32 %v550_v52, %v179_v49 }
  0xfa   :  { %v684_v54 = vmax.f32 %v556_v50, 0.0 }
  0xfb   :  { %v683_v56 = vmax.f32 %v551_v51, 0.0  ;;  %v1096_v57 = vpop.f32.mrb[16].mxu0 }
  0xfc   :  { %v566_v58 = vadd.f32 %v1096_v57, %v1551_v24  ;;  %v560_v59 = vpop.f32.mrb[17].mxu0 }
  0xfd   :  { %v1596_v60 = vpack.c.bf16 %v684_v54, %v683_v56  ;;  %v561_v63 = vadd.f32 %v560_v59, %v1546_v21 }
  0xfe   :  { %v686_v1 = vmax.f32 %v566_v58, 0.0 }
  0xff   :  { %v685_v2 = vmax.f32 %v561_v63, 0.0  ;;  %v1099_v3 = vpop.f32.mrb[18].mxu0 }
 0x100   :  { %v576_v4 = vadd.f32 %v1099_v3, %v1553_v25  ;;  %v570_v5 = vpop.f32.mrb[19].mxu0 }
 0x101   :  { %v571_v7 = vadd.f32 %v570_v5, %v1555_v26  ;;  %v1142_v8 = vpack.c.bf16 %v686_v1, %v685_v2 }
 0x102   :  { %v688_v9 = vmax.f32 %v576_v4, 0.0 }
 0x103   :  { %v687_v10 = vmax.f32 %v571_v7, 0.0  ;;  %v1102_v11 = vpop.f32.mrb[20].mxu0  ;;  %1143 = vmatprep.subr.bf16.mxu1 %v1142_v8 }
 0x104   :  { %v586_v24 = vadd.f32 %v1102_v11, %v1557_v29  ;;  %v580_v12 = vpop.f32.mrb[21].mxu0  ;;  %1145 = vmatpush3.bf16.msra.mxu1 %v1573_v55 }
 0x105   :  { %v1146_v13 = vpack.c.bf16 %v688_v9, %v687_v10  ;;  %v581_v21 = vadd.f32 %v580_v12, %v1559_v30 }
 0x106   :  { %v690_v14 = vmax.f32 %v586_v24, 0.0 }
 0x107   :  { %v689_v16 = vmax.f32 %v581_v21, 0.0  ;;  %v1105_v17 = vpop.f32.mrb[22].mxu0  ;;  %1147 = vmatprep.subr.bf16.mxu1 %v1146_v13 }
 0x108   :  { %v596_v25 = vadd.f32 %v1105_v17, %v1561_v33  ;;  %v590_v26 = vpop.f32.mrb[23].mxu0  ;;  %1149 = vmatpush3.bf16.msra.mxu1 %v1577_v62 }
 0x109   :  { %v1150_v18 = vpack.c.bf16 %v690_v14, %v689_v16  ;;  %v591_v19 = vadd.f32 %v590_v26, %v1563_v34  ;;  %v709_v16 = vld [vmem:[%s1651_s3 + $0x10] sm:$0xff] }
 0x10a   :  { %v692_v20 = vmax.f32 %v596_v25, 0.0 }
 0x10b   :  { %v691_v29 = vmax.f32 %v591_v19, 0.0  ;;  %v1108_v22 = vpop.f32.mrb[24].mxu0  ;;  %1151 = vmatprep.subr.bf16.mxu1 %v1150_v18  ;;  %v712_v18 = vld [vmem:[%s1651_s3 + $0x28] sm:$0xff] }
 0x10c   :  { %v606_v55 = vadd.f32 %v1108_v22, %v1565_v37  ;;  %v600_v28 = vpop.f32.mrb[25].mxu0  ;;  %1153 = vmatpush3.bf16.msra.mxu1 %v1581_v6 }
 0x10d   :  { %v1154_v30 = vpack.c.bf16 %v692_v20, %v691_v29  ;;  %v601_v32 = vadd.f32 %v600_v28, %v1567_v38 }
 0x10e   :  { %v694_v35 = vmax.f32 %v606_v55, 0.0 }
 0x10f   :  { %v693_v33 = vmax.f32 %v601_v32, 0.0  ;;  %v1111_v36 = vpop.f32.mrb[26].mxu0  ;;  %1155 = vmatprep.subr.bf16.mxu1 %v1154_v30 }
 0x110   :  { %v616_v62 = vadd.f32 %v1111_v36, %v1569_v41  ;;  %v610_v39 = vpop.f32.mrb[27].mxu0  ;;  %1157 = vmatpush3.bf16.msra.mxu1 %v1583_v15  ;;  %v274_v41 = vpop.permute.xlu1 %273 }
 0x111   :  { %v1158_v34 = vpack.c.bf16 %v694_v35, %v693_v33  ;;  %v611_v43 = vadd.f32 %v610_v39, %v1571_v42  ;;  %v269_v15 = vpop.permute.xlu0 %268 }
 0x112   :  { %v696_v40 = vmax.f32 %v616_v62, 0.0 }
 0x113   :  { %v695_v37 = vmax.f32 %v611_v43, 0.0  ;;  %v1114_v45 = vpop.f32.mrb[28].mxu0  ;;  %1159 = vmatprep.subr.bf16.mxu1 %v1158_v34 }
 0x114   :  { %v626_v6 = vadd.f32 %v1114_v45, %v1575_v61  ;;  %v620_v46 = vpop.f32.mrb[29].mxu0  ;;  %1161 = vmatpush3.bf16.msra.mxu1 %v1587_v27  ;;  %v284_v58 = vpop.permute.xlu1 %283 }
 0x115   :  { %v1162_v38 = vpack.c.bf16 %v696_v40, %v695_v37  ;;  %v621_v47 = vadd.f32 %v620_v46, %v1579_v0  ;;  %v279_v1 = vpop.permute.xlu0 %278 }
 0x116   :  { %v698_v48 = vmax.f32 %v626_v6, 0.0 }
 0x117   :  { %v697_v49 = vmax.f32 %v621_v47, 0.0  ;;  %v1117_v50 = vpop.f32.mrb[30].mxu0  ;;  %1163 = vmatprep.subr.bf16.mxu1 %v1162_v38 }
 0x118   :  { %v636_v42 = vadd.f32 %v1117_v50, %v1585_v23  ;;  %v630_v52 = vpop.f32.mrb[31].mxu0  ;;  %1165 = vmatpush3.bf16.msra.mxu1 %v1591_v44  ;;  %v294_v9 = vpop.permute.xlu1 %293 }
 0x119   :  { %v1166_v51 = vpack.c.bf16 %v698_v48, %v697_v49  ;;  %v631_v61 = vadd.f32 %v630_v52, %v1589_v31  ;;  %v707_v31 = vld [vmem:[%s1651_s3] sm:$0xff]  ;;  %v289_v24 = vpop.permute.xlu0 %288  ;;  %v914_v48 = vlaneseq }
 0x11a   :  { %v700_v54 = vmax.f32 %v636_v42, 0.0 }
 0x11b   :  { %v699_v56 = vmax.f32 %v631_v61, 0.0  ;;  %v1120_v27 = vpop.f32.mrb[32].mxu0  ;;  %1167 = vmatprep.subr.bf16.mxu1 %v1166_v51  ;;  %v915_v50 = vshrl.u32 %v914_v48, 7 }
 0x11c   :  { %v646_v57 = vadd.f32 %v1120_v27, %v274_v41  ;;  %v640_v0 = vpop.f32.mrb[33].mxu0  ;;  %1169 = vmatpush3.bf16.msra.mxu1 %v1593_v53  ;;  %v711_v53 = vld [vmem:[%s1651_s3 + $0x20] sm:$0xff]  ;;  %v723_v30 = vpop.permute.xlu1 %722 }
 0x11d   :  { %v1170_v59 = vpack.c.bf16 %v700_v54, %v699_v56  ;;  %v641_v63 = vadd.f32 %v640_v0, %v269_v15  ;;  %v718_v32 = vpop.permute.xlu0 %717  ;;  %v916_v52 = vsub.s32 0, %v915_v50 }
 0x11e   :  { %v702_v2 = vmax.f32 %v646_v57, 0.0 }
 0x11f   :  { %v701_v23 = vmax.f32 %v641_v63, 0.0  ;;  %v1123_v3 = vpop.f32.mrb[34].mxu0  ;;  %1171 = vmatprep.subr.bf16.mxu1 %v1170_v59 }
 0x120   :  { %v656_v44 = vadd.f32 %v1123_v3, %v284_v58  ;;  %v650_v4 = vpop.f32.mrb[35].mxu0  ;;  %1173 = vmatpush3.bf16.msra.mxu1 %v1596_v60  ;;  %v710_v60 = vld [vmem:[%s1651_s3 + $0x18] sm:$0xff]  ;;  %v894_v40 = vpop.permute.xlu1 %893  ;;  %s1219_s3 = smov [#allocation3]  }
 0x121   :  { %v1174_v5 = vpack.c.bf16 %v702_v2, %v701_v23  ;;  %v651_v7 = vadd.f32 %v650_v4, %v279_v1  ;;  %v889_v45 = vpop.permute.xlu0 %888  ;;  %s933_s21 = sshll.u32 %s1219_s3, 4  ;;  %s934_s21 = int_to_ptr.vmem [resolvable:$true] %s933_s21 }
 0x122   :  { %v704_v8 = vmax.f32 %v656_v44, 0.0  ;;  %s1194_s22 = scalar_lea.vmem %s934_s21, 16  ;;  %s1198_s23 = scalar_lea.vmem %s934_s21, 32 }
 0x123   :  { %v703_v10 = vmax.f32 %v651_v7, 0.0  ;;  %v1126_v11 = vpop.f32.mrb[36].mxu0  ;;  %797 = vmatmul.mubr.f32.vlgmr.msra.gmra.mrb[0].mxu1 %v707_v31  ;;  %1175 = vmatprep.subr.bf16.mxu1 %v1174_v5  ;;  %p1195_p0 = scmp.ne.s32.totalorder %s934_s21, %s1194_s22  ;;  %p1199_p1 = scmp.lt.s32.totalorder %s934_s21, %s934_s21 }
 0x124   :  { %v666_v12 = vadd.f32 %v1126_v11, %v294_v9  ;;  %v660_v13 = vpop.f32.mrb[37].mxu0  ;;  %1177 = vmatpush3.bf16.msra.mxu1 %v1174_v5  ;;  %801 = vmatprep.mubr.f32.mxu1 %v711_v53  ;;  %p1200_p2 = scmp.lt.s32.totalorder %s1198_s23, %s1194_s22 }
 0x125   :  { %v1178_v21 = vpack.c.bf16 %v704_v8, %v703_v10  ;;  %v661_v14 = vadd.f32 %v660_v13, %v289_v24  ;;  %v912_v61 = vpop.permute.xlu0 %911 }
 0x126   :  { %v706_v17 = vmax.f32 %v666_v12, 0.0  ;;  %v917_v56 = vrot.slane %v912_v61, %v916_v52  ;;  %p1201_p3 = por %p1200_p2, %p1199_p1 }
 0x127   :  { %v705_v25 = vmax.f32 %v661_v14, 0.0  ;;  %802 = vmatmul.mubr.f32.gmra.mrb[2].mxu1 %v710_v60  ;;  %1179 = vmatprep.subr.bf16.mxu1 %v1178_v21 }
 0x128   :  { %1181 = vmatpush3.bf16.msra.mxu1 %v1178_v21  ;;  %1139 = vmatprep.mubr.msk.f32.mxu1 %vm725_vm1, %v709_v16  ;;  %p1202_p4 = pnand %p1201_p3, %p1195_p0 }
 0x129   :  { %v1182_v26 = vpack.c.bf16 %v706_v17, %v705_v25 }
 0x12b   :  { %1183 = vmatprep.subr.bf16.mxu1 %v1182_v26 }
 0x12c   :  { %1185 = vmatpush3.bf16.msra.mxu1 %v1182_v26 }
 0x12f   :  { %1140 = vmatmul.mubr.msk.f32.vlgmr.msra.gmra.mrb[4].mxu1 %vm725_vm1, %v712_v18 }
 0x1f6   :  { %v1054_v19 = vpop.f32.mrb[0].mxu1 }
 0x1f7   :  { %v1055_v20 = vpop.f32.mrb[1].mxu1 }
 0x1f8   :  { %v1056_v29 = vadd.f32 %v1055_v20, %v1054_v19 }
 0x1fa   :  { %v1057_v22 = vpop.f32.mrb[2].mxu1  ;;  %v799_v36 = vadd.f32 %v1056_v29, %v718_v32 }
 0x1fb   :  { %v1058_v55 = vpop.f32.mrb[3].mxu1 }
 0x1fc   :  { %v1059_v28 = vadd.f32 %v1058_v55, %v1057_v22 }
 0x1fe   :  { %v804_v35 = vadd.f32 %v1059_v28, %v723_v30 }
 0x202   :  { %v1141_v33 = vpop.f32.mrb[4].mxu1 }
 0x203   :  { %v879_v62 = vadd.f32 %v1141_v33, %v804_v35  ;;  %v873_v39 = vpop.f32.mrb[5].mxu1 }
 0x204   :  { %v874_v34 = vadd.f32 %v873_v39, %v799_v36 }
 0x205   :  { %v883_v43 = vmax.f32 %v879_v62, 0.0 }
 0x206   :  { %v882_v37 = vmax.f32 %v874_v34, 0.0 }
 0x207   :  { %v897_v6 = vmul.f32 %v894_v40, %v883_v43 }
 0x208   :  { %v896_v46 = vmul.f32 %v889_v45, %v882_v37 }
 0x209   :  { %v900_v38 = vsel %vm898_vm2, %v897_v6, 0.0 }
 0x20a   :  { %v899_v47 = vsel %vm898_vm2, %v896_v46, 0.0 }
 0x20b   :  { %v901_v41 = vadd.f32 %v900_v38, %v899_v47 }
 0x20d   :  { %v902_v49 = vrot.slane %v901_v41, 4 }
 0x20f   :  { %v903_v15 = vadd.f32 %v902_v49, %v901_v41 }
 0x211   :  { %v904_v42 = vrot.slane %v903_v15, 2 }
 0x213   :  { %v905_v51 = vadd.f32 %v904_v42, %v903_v15 }
 0x215   :  { %v906_v54 = vrot.slane %v905_v51, 1 }
 0x217   :  { %v907_v27 = vadd.f32 %v906_v54, %v905_v51 }
 0x219   :  { %v918_v57 = vadd.f32 %v917_v56, %v907_v27 }
 0x21b   :  { %v982_v0 = vmul.f32 -1.442695, %v918_v57 }
 0x21d   :  { %1190 = vpow2.f32 %v982_v0 }
 0x227   :  { %v1191_v58 = vpop.eup %1190 }
 0x228   :  { %v922_v59 = vadd.f32 1.0, %v1191_v58 }
 0x22a   :  { %1192 = vrcp.f32 %v922_v59 }
 0x234   :  { %v1193_v63 = vpop.eup %1192 }
 0x235   :  { %926 = vst.msk [vmem:[#allocation3] sm:$0x1] %vm925_vm3, %v1193_v63 }
 0x236   :  { %1205 = shalt.err (!%p1202_p4)
}
 0x237   :  { %s1206_s26 = scalar_lea.hbm %s1655_s7, 16 }
 0x238   :  { %p1207_p5 = scmp.ne.s32.totalorder %s1655_s7, %s1206_s26  ;;  %p1210_p6 = scmp.lt.u32.totalorder %s1206_s26, %s1655_s7 }
 0x23a   :  { %p1212_p7 = pnand %p1210_p6, %p1207_p5 }
 0x23c   :  { %1215 = shalt.err (!%p1212_p7)
}
 0x23d   :  { %936 = dma.vmem_to_hbm [thread:$0]  %s934_s21, 16, %s1655_s7, [#allocation4]  }
 0x23e   :  { %1216 = dma.done.wait [#allocation4], 16  }
 0x23f   :  { %1217 = vsyncadd [#allocation4], 4294967280 }
 0x240   :  { %940 = vsyncpa [#allocation4], 1 }

</bundles_post_ra>
